<compile_context>
chip_gen: v7x
topology: tpu7x:2x2x1
jax: 0.10.0
libtpu: 0.0.40
codegen_flags: <defaults>
</compile_context>

<pallas_src>
import functools
import math

import jax
import jax.numpy as jnp
from jax.experimental import pallas as pl
from jax.experimental.pallas import tpu as pltpu

_LANE = 128
_SUBLANE_BF16 = 16


def _round_up(n, m):
    return ((n + m - 1) // m) * m


def _vmem_capacity_bytes():
    """Physical VMEM per TensorCore (v5e/v6e: 128 MiB, v7x: 64 MiB)."""
    try:
        return int(pltpu.get_tpu_info().vmem_capacity_bytes)
    except Exception:
        return 64 << 20  # conservative fallback (v7x per-core)


def _copy_probe_kernel(x_ref, o_ref):
    o_ref[...] = x_ref[...]


@functools.lru_cache(maxsize=1)
def _single_buffer_supported():
    """Probe once whether pipeline_mode=pl.Buffered(1) is accepted by this JAX
    (constant-index blocks only need one VMEM buffer)."""
    if not hasattr(pl, "Buffered"):
        return False
    try:
        spec = pl.BlockSpec((8, _LANE), lambda i: (0, 0), pipeline_mode=pl.Buffered(1))
        out = pl.pallas_call(
            _copy_probe_kernel,
            out_shape=jax.ShapeDtypeStruct((16, _LANE), jnp.float32),
            grid=(2,),
            in_specs=[spec],
            out_specs=pl.BlockSpec((8, _LANE), lambda i: (i, 0)),
        )(jnp.zeros((8, _LANE), jnp.float32))
        jax.block_until_ready(out)
        return True
    except Exception:
        return False


def _resident_spec(shape, index_map):
    """Spec for VMEM-resident (constant index_map) weight/bias blocks."""
    if _single_buffer_supported():
        return pl.BlockSpec(shape, index_map, pipeline_mode=pl.Buffered(1))
    return pl.BlockSpec(shape, index_map)


def _fused_chain_kernel(x_ref, *refs, num_layers, apply_sigmoid, approx_recip):
    """x_ref: [TM, in_pad] (compute dtype).
    refs = (w0, b0, ..., w_{L-1}, b_{L-1}, o_ref).
      w_i: [in_pad_i, out_pad_i] compute dtype (zero padded)
      b_i: [1, out_pad_i] f32
      o_ref: [TM, out_pad_last] out dtype
    """
    o_ref = refs[-1]
    h = x_ref[...]
    for i in range(num_layers):
        w = refs[2 * i][...]
        b = refs[2 * i + 1][...]  # f32, broadcasts over batch rows
        # MXU matmul with f32 accumulation; bias add in f32 on the VPU.
        y = b + jnp.dot(h, w, preferred_element_type=jnp.float32)
        if i < num_layers - 1:
            h = y.astype(x_ref.dtype)  # back to the MXU compute dtype
        else:
            if apply_sigmoid:
                if approx_recip:
                    # exp + approximate reciprocal (vrcp): both on the EUP slot.
                    y = pl.reciprocal(1.0 + jnp.exp(-y), approx=True)
                else:
                    y = jax.nn.sigmoid(y)
            o_ref[...] = y.astype(o_ref.dtype)


def init_dnn_params(key, hidden_units):
    """Deterministic init mimicking torch.nn.Linear default U(-1/sqrt(in), 1/sqrt(in))."""
    params = []
    for i in range(len(hidden_units) - 1):
        fan_in, fan_out = hidden_units[i], hidden_units[i + 1]
        key, kw, kb = jax.random.split(key, 3)
        bound = 1.0 / math.sqrt(fan_in)
        w = jax.random.uniform(kw, (fan_in, fan_out), jnp.float32, -bound, bound)
        b = jax.random.uniform(kb, (fan_out,), jnp.float32, -bound, bound)
        params.append((w, b))
    return params


class PallasDNN:
    """Fused Pallas implementation of DNN.forward (chain of Linear layers,
    Sigmoid after the last layer iff activate_last)."""

    def __init__(self, params, *, use_bn=False, activate_last=False,
                 compute_dtype=jnp.bfloat16, out_dtype=jnp.float32,
                 max_batch_tile=None):
        if use_bn and activate_last:
            # In the PyTorch reference BatchNorm1d is only constructed when BOTH
            # activate_last and use_bn are set (BN is nested under the
            # activate_last branch); use_bn=True with activate_last=False is a
            # no-op there as well, so it is accepted silently here too.
            # TODO(synk): training-mode BatchNorm1d (batch statistics) is not
            # implemented in-kernel.
            raise NotImplementedError("use_bn=True with activate_last=True is not supported")

        self.activate_last = bool(activate_last)
        self.compute_dtype = jnp.dtype(compute_dtype)
        self.out_dtype = jnp.dtype(out_dtype)
        self.vmem_cap = _vmem_capacity_bytes()
        if max_batch_tile is None:
            # Larger batch tiles amortize the ~0.35 us per-grid-step overhead
            # where the 128 MiB VMEM generations allow it.
            max_batch_tile = 1024 if self.vmem_cap >= (100 << 20) else 512
        self.max_batch_tile = max(16, int(max_batch_tile))

        # Pad + cast every weight/bias ONCE (no per-call jnp.zeros().at[].set()
        # + astype traffic over the parameters).
        # TODO(synk): optional int8 (v5e/v6e) / fp8 (v7x) weight path not implemented.
        self.in_dim = params[0][0].shape[0]
        self.out_dim = params[-1][0].shape[1]
        self.layers = []
        for (w, b) in params:
            in_d, out_d = w.shape
            in_p, out_p = _round_up(in_d, _LANE), _round_up(out_d, _LANE)
            wp = jnp.zeros((in_p, out_p), self.compute_dtype)
            wp = wp.at[:in_d, :out_d].set(w.astype(self.compute_dtype))
            bp = jnp.zeros((1, out_p), jnp.float32)
            bp = bp.at[0, :out_d].set(b.astype(jnp.float32))
            self.layers.append((wp, bp))

    # ------------------------------------------------------------------ #
    def __call__(self, x):
        x = jnp.asarray(x)
        B, in_dim = x.shape
        if in_dim != self.in_dim:
            raise ValueError(f"expected input dim {self.in_dim}, got {in_dim}")
        cdt = self.compute_dtype

        # ---- batch pad / tile choice ----
        sub = _SUBLANE_BF16 if cdt == jnp.bfloat16 else 8
        B_pad = _round_up(B, sub)
        if B_pad <= 256:
            tm = B_pad  # batch too small to usefully split
        else:
            # >= 2 batch tiles (megacore sharding on v7x); prefer multiples of
            # 256 (v6e/v7x MXU height) when the batch allows it.
            half = pl.cdiv(B_pad, 2)
            if half >= 256:
                tm = max(256, min(self.max_batch_tile, (half // 256) * 256))
            else:
                tm = min(self.max_batch_tile, _round_up(half, 16))
            B_pad = _round_up(B_pad, tm)
        num_tiles = B_pad // tm

        # ---- VMEM-aware fusion plan ----
        budget = int(self.vmem_cap * 0.7)  # leave headroom for compiler scratch
        groups = self._plan_groups(tm, budget)

        # ---- pad the input once ----
        in_p0 = self.layers[0][0].shape[0]
        if B_pad == B and in_p0 == in_dim:
            h = x.astype(cdt)
        else:
            h = jnp.zeros((B_pad, in_p0), cdt).at[:B, :in_dim].set(x.astype(cdt))

        # ---- run the (usually single) fused group(s) ----
        for gi, group in enumerate(groups):
            last = gi == len(groups) - 1
            h = self._run_group(
                h, group, tm=tm,
                apply_sigmoid=last and self.activate_last,
                out_dtype=self.out_dtype if last else cdt)

        return h[:B, : self.out_dim]

    # ------------------------------------------------------------------ #
    def _plan_groups(self, tm, budget):
        """Greedily pack consecutive layers into fused pallas_call groups whose
        resident weights + activation slabs fit the VMEM budget."""
        cdt_b = self.compute_dtype.itemsize
        groups, cur, cur_wbytes = [], [], 0
        for (wp, bp) in self.layers:
            wbytes = wp.size * wp.dtype.itemsize + bp.size * bp.dtype.itemsize
            in_p = cur[0][0].shape[0] if cur else wp.shape[0]
            max_mid = max([w.shape[1] for (w, _) in cur] + [wp.shape[1]])
            act = (2 * tm * in_p * cdt_b        # double-buffered input tile
                   + 2 * tm * wp.shape[1] * 4   # double-buffered output tile (<= f32)
                   + 2 * tm * max_mid * 4)      # f32 intermediate headroom
            if cur and cur_wbytes + wbytes + act > budget:
                groups.append(cur)
                cur, cur_wbytes = [], 0
            cur.append((wp, bp))
            cur_wbytes += wbytes
        groups.append(cur)
        # TODO(synk): a single layer whose padded weights alone exceed VMEM would
        # additionally need output-feature (N) tiling; not implemented here.
        return groups

    # ------------------------------------------------------------------ #
    def _run_group(self, h, group, *, tm, apply_sigmoid, out_dtype):
        B_pad, in_p = h.shape
        num_tiles = B_pad // tm
        out_p = group[-1][0].shape[1]
        out_dtype = jnp.dtype(out_dtype)

        wb_args, wb_specs = [], []
        for (wp, bp) in group:
            wb_args += [wp, bp]
            # Constant index_map -> weights/biases stay VMEM-resident across
            # batch tiles, single-buffered where supported.
            wb_specs += [
                _resident_spec(wp.shape, lambda i: (0, 0)),
                _resident_spec(bp.shape, lambda i: (0, 0)),
            ]

        kernel = functools.partial(
            _fused_chain_kernel,
            num_layers=len(group),
            apply_sigmoid=apply_sigmoid,
            approx_recip=self.compute_dtype != jnp.float32)

        # Explicit VMEM limit: resident weights (x2 margin in case single
        # buffering is unavailable) + double-buffered in/out tiles + f32
        # intermediate slab + fixed margin; clamped to physical VMEM.
        wbytes = sum(wp.size * wp.dtype.itemsize + bp.size * bp.dtype.itemsize
                     for (wp, bp) in group)
        max_mid = max(wp.shape[1] for (wp, _) in group)
        need = (2 * wbytes
                + 2 * tm * in_p * self.compute_dtype.itemsize
                + 2 * tm * out_p * out_dtype.itemsize
                + 2 * tm * max_mid * 4
                + (4 << 20))
        vmem_limit = int(min(self.vmem_cap, max(need, 32 << 20)))

        flops = 2 * B_pad * sum(wp.shape[0] * wp.shape[1] for (wp, _) in group)
        transcend = B_pad * out_p if apply_sigmoid else 0
        bytes_acc = (B_pad * in_p * self.compute_dtype.itemsize
                     + wbytes
                     + B_pad * out_p * out_dtype.itemsize)

        return pl.pallas_call(
            kernel,
            out_shape=jax.ShapeDtypeStruct((B_pad, out_p), out_dtype),
            grid=(num_tiles,),
            in_specs=[pl.BlockSpec((tm, in_p), lambda i: (i, 0))] + wb_specs,
            out_specs=pl.BlockSpec((tm, out_p), lambda i: (i, 0)),
            compiler_params=pltpu.CompilerParams(
                dimension_semantics=("parallel",),
                vmem_limit_bytes=vmem_limit),
            cost_estimate=pl.CostEstimate(
                flops=int(flops),
                transcendentals=int(transcend),
                bytes_accessed=int(bytes_acc)),
        )(h, *wb_args)


def dnn_forward(x, params, *, use_bn=False, activate_last=False, **kwargs):
    """One-shot convenience wrapper.  For repeated calls, build a PallasDNN once
    (weights are padded/cast at construction, not per call)."""
    return PallasDNN(params, use_bn=use_bn, activate_last=activate_last, **kwargs)(x)


if __name__ == "__main__":
    key = jax.random.PRNGKey(0)
    hidden_units = [32, 64, 32, 16]

    key, kx, kx2 = jax.random.split(key, 3)
    params = init_dnn_params(key, hidden_units)

    # --- small batch, activate_last=True (Linear chain + Sigmoid) ---
    batch = 8
    x = jax.random.normal(kx, (batch, hidden_units[0]), jnp.float32)
    model = PallasDNN(params, use_bn=False, activate_last=True)  # weights padded/cast once
    out = jax.block_until_ready(model(x))

    ref = x
    for i, (w, b) in enumerate(params):
        ref = ref @ w + b
        if i == len(params) - 1:
            ref = jax.nn.sigmoid(ref)
    assert out.shape == (batch, hidden_units[-1])
    assert jnp.allclose(out, ref, atol=3e-2, rtol=3e-2), float(jnp.max(jnp.abs(out - ref)))

    # --- larger batch, activate_last=False: exercises the >=2-tile (megacore) path ---
    batch2 = 300
    x2 = jax.random.normal(kx2, (batch2, hidden_units[0]), jnp.float32)
    model2 = PallasDNN(params, use_bn=False, activate_last=False)
    out2 = jax.block_until_ready(model2(x2))

    ref2 = x2
    for (w, b) in params:
        ref2 = ref2 @ w + b
    assert out2.shape == (batch2, hidden_units[-1])
    assert jnp.allclose(out2, ref2, atol=5e-2, rtol=5e-2), float(jnp.max(jnp.abs(out2 - ref2)))

    print("KERNEL_OK")
</pallas_src>

<mosaic_0001>
module attributes {stable_mosaic.version = 11 : i64} {
  func.func @_copy_probe_kernel(%arg0: i32, %arg1: memref<8x128xf32, #tpu.memory_space<vmem>>, %arg2: memref<8x128xf32, #tpu.memory_space<vmem>>) attributes {dimension_semantics = [#tpu.dimension_semantics<arbitrary>], iteration_bounds = array<i64: 2>, scalar_prefetch = 0 : i64, scratch_operands = 0 : i64, tpu.core_type = #tpu.core_type<tc>, window_params = [{pipeline_mode = #tpu.pipeline_mode<synchronous>, transform_indices = @transform_0, window_bounds = array<i64: 8, 128>}, {transform_indices = @transform_1, window_bounds = array<i64: 8, 128>}]} {
    %c0 = arith.constant 0 : index
    %c0_0 = arith.constant 0 : index
    %0 = vector.load %arg1[%c0, %c0_0] : memref<8x128xf32, #tpu.memory_space<vmem>>, vector<8x128xf32>
    %c0_1 = arith.constant 0 : index
    %c0_2 = arith.constant 0 : index
    %1 = vector.load %arg2[%c0_1, %c0_2] : memref<8x128xf32, #tpu.memory_space<vmem>>, vector<8x128xf32>
    tpu.vector_store %arg2[%c0_1, %c0_2], %0 {strides = array<i32>} : memref<8x128xf32, #tpu.memory_space<vmem>>, vector<8x128xf32>,
    return
  }
  func.func @transform_0(%arg0: i32) -> (i32, i32) {
    %c0_i32 = arith.constant 0 : i32
    %c0_i32_0 = arith.constant 0 : i32
    %c0_i32_1 = arith.constant 0 : i32
    return %c0_i32, %c0_i32_0 : i32, i32
  }
  func.func @transform_1(%arg0: i32) -> (i32, i32) {
    %c0_i32 = arith.constant 0 : i32
    %c0_i32_0 = arith.constant 0 : i32
    return %arg0, %c0_i32 : i32, i32
  }
}

module attributes {stable_mosaic.version = 11 : i64} {
  func.func @_fused_chain_kernel(%arg0: i32, %arg1: memref<16x128xbf16, #tpu.memory_space<vmem>>, %arg2: memref<128x128xbf16, #tpu.memory_space<vmem>>, %arg3: memref<1x128xf32, #tpu.memory_space<vmem>>, %arg4: memref<128x128xbf16, #tpu.memory_space<vmem>>, %arg5: memref<1x128xf32, #tpu.memory_space<vmem>>, %arg6: memref<128x128xbf16, #tpu.memory_space<vmem>>, %arg7: memref<1x128xf32, #tpu.memory_space<vmem>>, %arg8: memref<16x128xf32, #tpu.memory_space<vmem>>) attributes {dimension_semantics = [#tpu.dimension_semantics<parallel>], iteration_bounds = array<i64: 1>, scalar_prefetch = 0 : i64, scratch_operands = 0 : i64, tpu.core_type = #tpu.core_type<tc>, window_params = [{transform_indices = @transform_0, window_bounds = array<i64: 16, 128>}, {pipeline_mode = #tpu.pipeline_mode<synchronous>, transform_indices = @transform_1, window_bounds = array<i64: 128, 128>}, {pipeline_mode = #tpu.pipeline_mode<synchronous>, transform_indices = @transform_2, window_bounds = array<i64: 1, 128>}, {pipeline_mode = #tpu.pipeline_mode<synchronous>, transform_indices = @transform_3, window_bounds = array<i64: 128, 128>}, {pipeline_mode = #tpu.pipeline_mode<synchronous>, transform_indices = @transform_4, window_bounds = array<i64: 1, 128>}, {pipeline_mode = #tpu.pipeline_mode<synchronous>, transform_indices = @transform_5, window_bounds = array<i64: 128, 128>}, {pipeline_mode = #tpu.pipeline_mode<synchronous>, transform_indices = @transform_6, window_bounds = array<i64: 1, 128>}, {transform_indices = @transform_7, window_bounds = array<i64: 16, 128>}]} {
    %c0 = arith.constant 0 : index
    %c0_0 = arith.constant 0 : index
    %0 = vector.load %arg1[%c0, %c0_0] : memref<16x128xbf16, #tpu.memory_space<vmem>>, vector<16x128xbf16>
    %c0_1 = arith.constant 0 : index
    %c0_2 = arith.constant 0 : index
    %1 = vector.load %arg2[%c0_1, %c0_2] : memref<128x128xbf16, #tpu.memory_space<vmem>>, vector<128x128xbf16>
    %c0_3 = arith.constant 0 : index
    %c0_4 = arith.constant 0 : index
    %2 = vector.load %arg3[%c0_3, %c0_4] : memref<1x128xf32, #tpu.memory_space<vmem>>, vector<1x128xf32>
    %cst = arith.constant dense<0.000000e+00> : vector<16x128xf32>
    %3 = tpu.matmul %0, %1, %cst {dimension_numbers = #tpu.dot_dimension_numbers<[1], [0], [0], [1], [0, 0, 1, 1], [], []>} : vector<16x128xbf16>, vector<128x128xbf16>, vector<16x128xf32> -> vector<16x128xf32>
    %4 = vector.broadcast %2 : vector<1x128xf32> to vector<16x128xf32>
    %5 = arith.addf %4, %3 : vector<16x128xf32>
    %6 = arith.truncf %5 : vector<16x128xf32> to vector<16x128xbf16>
    %c0_5 = arith.constant 0 : index
    %c0_6 = arith.constant 0 : index
    %7 = vector.load %arg4[%c0_5, %c0_6] : memref<128x128xbf16, #tpu.memory_space<vmem>>, vector<128x128xbf16>
    %c0_7 = arith.constant 0 : index
    %c0_8 = arith.constant 0 : index
    %8 = vector.load %arg5[%c0_7, %c0_8] : memref<1x128xf32, #tpu.memory_space<vmem>>, vector<1x128xf32>
    %cst_9 = arith.constant dense<0.000000e+00> : vector<16x128xf32>
    %9 = tpu.matmul %6, %7, %cst_9 {dimension_numbers = #tpu.dot_dimension_numbers<[1], [0], [0], [1], [0, 0, 1, 1], [], []>} : vector<16x128xbf16>, vector<128x128xbf16>, vector<16x128xf32> -> vector<16x128xf32>
    %10 = vector.broadcast %8 : vector<1x128xf32> to vector<16x128xf32>
    %11 = arith.addf %10, %9 : vector<16x128xf32>
    %12 = arith.truncf %11 : vector<16x128xf32> to vector<16x128xbf16>
    %c0_10 = arith.constant 0 : index
    %c0_11 = arith.constant 0 : index
    %13 = vector.load %arg6[%c0_10, %c0_11] : memref<128x128xbf16, #tpu.memory_space<vmem>>, vector<128x128xbf16>
    %c0_12 = arith.constant 0 : index
    %c0_13 = arith.constant 0 : index
    %14 = vector.load %arg7[%c0_12, %c0_13] : memref<1x128xf32, #tpu.memory_space<vmem>>, vector<1x128xf32>
    %cst_14 = arith.constant dense<0.000000e+00> : vector<16x128xf32>
    %15 = tpu.matmul %12, %13, %cst_14 {dimension_numbers = #tpu.dot_dimension_numbers<[1], [0], [0], [1], [0, 0, 1, 1], [], []>} : vector<16x128xbf16>, vector<128x128xbf16>, vector<16x128xf32> -> vector<16x128xf32>
    %16 = vector.broadcast %14 : vector<1x128xf32> to vector<16x128xf32>
    %17 = arith.addf %16, %15 : vector<16x128xf32>
    %cst_15 = arith.constant 0.000000e+00 : f32
    %18 = vector.broadcast %cst_15 : f32 to vector<16x128xf32>
    %19 = arith.subf %18, %17 : vector<16x128xf32>
    %20 = math.exp %19 : vector<16x128xf32>
    %cst_16 = arith.constant 1.000000e+00 : f32
    %21 = vector.broadcast %cst_16 : f32 to vector<16x128xf32>
    %22 = arith.addf %21, %20 : vector<16x128xf32>
    %23 = tpu.reciprocal %22 {approx = true} : vector<16x128xf32> -> vector<16x128xf32>
    %c0_17 = arith.constant 0 : index
    %c0_18 = arith.constant 0 : index
    %24 = vector.load %arg8[%c0_17, %c0_18] : memref<16x128xf32, #tpu.memory_space<vmem>>, vector<16x128xf32>
    tpu.vector_store %arg8[%c0_17, %c0_18], %23 {strides = array<i32>} : memref<16x128xf32, #tpu.memory_space<vmem>>, vector<16x128xf32>,
    return
  }
  func.func @transform_0(%arg0: i32) -> (i32, i32) {
    %c0_i32 = arith.constant 0 : i32
    %c0_i32_0 = arith.constant 0 : i32
    return %arg0, %c0_i32 : i32, i32
  }
  func.func @transform_1(%arg0: i32) -> (i32, i32) {
    %c0_i32 = arith.constant 0 : i32
    %c0_i32_0 = arith.constant 0 : i32
    %c0_i32_1 = arith.constant 0 : i32
    return %c0_i32, %c0_i32_0 : i32, i32
  }
  func.func @transform_2(%arg0: i32) -> (i32, i32) {
    %c0_i32 = arith.constant 0 : i32
    %c0_i32_0 = arith.constant 0 : i32
    %c0_i32_1 = arith.constant 0 : i32
    return %c0_i32, %c0_i32_0 : i32, i32
  }
  func.func @transform_3(%arg0: i32) -> (i32, i32) {
    %c0_i32 = arith.constant 0 : i32
    %c0_i32_0 = arith.constant 0 : i32
    %c0_i32_1 = arith.constant 0 : i32
    return %c0_i32, %c0_i32_0 : i32, i32
  }
  func.func @transform_4(%arg0: i32) -> (i32, i32) {
    %c0_i32 = arith.constant 0 : i32
    %c0_i32_0 = arith.constant 0 : i32
    %c0_i32_1 = arith.constant 0 : i32
    return %c0_i32, %c0_i32_0 : i32, i32
  }
  func.func @transform_5(%arg0: i32) -> (i32, i32) {
    %c0_i32 = arith.constant 0 : i32
    %c0_i32_0 = arith.constant 0 : i32
    %c0_i32_1 = arith.constant 0 : i32
    return %c0_i32, %c0_i32_0 : i32, i32
  }
  func.func @transform_6(%arg0: i32) -> (i32, i32) {
    %c0_i32 = arith.constant 0 : i32
    %c0_i32_0 = arith.constant 0 : i32
    %c0_i32_1 = arith.constant 0 : i32
    return %c0_i32, %c0_i32_0 : i32, i32
  }
  func.func @transform_7(%arg0: i32) -> (i32, i32) {
    %c0_i32 = arith.constant 0 : i32
    %c0_i32_0 = arith.constant 0 : i32
    return %arg0, %c0_i32 : i32, i32
  }
}

</mosaic_0001>

<bundles_post_ra>
// kernel: tpu_custom_call.1
= control target key start
LH: loop header
LB: loop body
LE: loop exit
PB: predicated region body
PF: predicated region fallthrough
CT: control target
= control target key end

     0   :  { %6 = vsyncpa [#allocation3], 0  ;;  %s481_s0 = inlined_call_operand.hbm [shape: f32[8,128], index: 0, kind: input, shape index: {}]   ;;  %s482_s1 = inlined_call_operand.hbm [shape: f32[16,128], index: 1, kind: output, shape index: {}]  }
   0x1   :  { %7 = vsyncpa [#allocation4], 0 }
   0x2   :  { %9 = vsyncpa [#allocation4 + $0x1], 0  ;;  %s351_s6 = smov 0   ;;  %s353_s7 = smov 0  }
   0x3   :  { %s355_s8 = smov 0   ;;  %s357_s9 = smov 0  }
   0x4 LB: > { %s372_s10 = sadd.s32 4294967295, %s337_s9   ;;  %s183_s11 = sadd.s32 4294967294, %s337_s9   ;;  %s337_s9 = sphi %s357_s9, %s498_s9   ;;  %s333_s8 = sphi %s355_s8, %s497_s8   ;;  %s329_s7 = sphi %s353_s7, %s496_s7   ;;  %s325_s6 = sphi %s351_s6, %s495_s6  }
   0x5   : > { %s376_s12 = sadd.s32 1, %s337_s9   ;;  %s43_s13 = sadd.s32 1, %s333_s8 }
   0x6   : > { %s40_s14 = ssub.s32 %s337_s9, %s376_s12  ;;  %p53_p0 = scmp.ne.s32.totalorder %s333_s8, %s329_s7 }
   0x7   : > { %p41_p1 = scmp.eq.s32.totalorder %s40_s14, 0  ;;  %p54_p2 = scmp.eq.s32.totalorder %s372_s10, 1 }
   0x8   : > { %p59_p3 = scmp.ne.s32.totalorder %s329_s7, %s325_s6  ;;  %p60_p4 = scmp.eq.s32.totalorder %s183_s11, 1 }
   0x9   : > { %s387_s15 = scalar_select %p41_p1, %s333_s8, %s43_s13  }
   0xa   : > { %p389_p5 = por %p54_p2, %p53_p0  ;;  %p393_p6 = por %p60_p4, %p59_p3 }
   0xb   : > { %p184_p7 = scmp.ge.s32.totalorder %s337_s9, 1  ;;  %p67_p8 = scmp.lt.s32.totalorder %s337_s9, 3 }
   0xc   : > { %s486_s16 = scalar_select %p389_p5, 1, 0 }
   0xd   : > { %s487_s17 = scalar_select %p393_p6, 1, 0 }
   0xe   : > { %p483_p9 = scmp.eq.s32.totalorder %s372_s10, 0  ;;  %p400_p10 = pnand %p184_p7, %p67_p8 }
   0xf   : > { %s339_s19 = smov [#allocation2]   ;;  %s243_s24 = scalar_lea.hbm %s481_s0, 128 }
  0x10   : > { %s488_s18 = scalar_select %p400_p10, 1, 0 }
  0x11   : > { %s80_s20 = sshll.u32 %s339_s19, 4  ;;  %p199_p11 = pneg %p400_p10  ;;  %s81_s20 = int_to_ptr.vmem [resolvable:$true] %s80_s20 }
  0x12   : > { %p244_p13 = scmp.ne.s32.totalorder %s481_s0, %s243_s24  ;;  %p250_p3 = scmp.lt.u32.totalorder %s243_s24, %s481_s0 }
  0x13   : > { %p408_p12 = pnand %p483_p9, %p199_p11 }
  0x15   : > { %p245_p0 = pneg %p408_p12 }
  0x17   : > { %p246_p1 = pnand %p245_p0, %p244_p13 }
  0x19   : > { %p247_p2 = pneg %p246_p1 }
  0x1b   : > { %p252_p4 = pnand %p250_p3, %p247_p2 }
  0x1d   : > { %255 = shalt.err (!%p252_p4)
}
  0x1e   : > { %s256_s29 = scalar_lea.vmem %s81_s20, 128  ;;  %p264_p9 = scmp.lt.s32.totalorder %s81_s20, %s81_s20 }
  0x1f   : > { %p257_p7 = scmp.ne.s32.totalorder %s81_s20, %s256_s29  ;;  %p265_p6 = scmp.lt.s32.totalorder %s256_s29, %s256_s29 }
  0x21   : > { %p259_p8 = pnand %p257_p7, %p245_p0  ;;  %p266_p5 = por %p265_p6, %p264_p9 }
  0x23   : > { %p260_p11 = pneg %p259_p8 }
  0x25   : > { %p267_p10 = pnand %p266_p5, %p260_p11 }
  0x27   : > { %270 = shalt.err (!%p267_p10)
}
  0x28   : > { %202 = dma.hbm_to_vmem [thread:$0]  (!%p408_p12), %s481_s0, 128, %s81_s20, [#allocation3]  }
  0x29   : > { %p490_p13 = scmp.ne.s32.totalorder %s488_s18, 0 }
  0x2a   : > { %p491_p1 = scmp.eq.s32.totalorder (!%p490_p13), %s372_s10, 0 }
  0x2b   : > { %93 = sbr.rel (%p490_p13) target bundleno = 77 (0x4d), region = 24 }
  0x32   : > { %316 = dma.done.wait (%p491_p1), [#allocation3], 128   ;;  %p492_p0 = pmov %p491_p1 }
  0x33   : > { %s105_s3 = sand.u32 1, %s329_s7   ;;  %s190_s13 = sshll.u32 %s372_s10, 7  ;;  %v108_v0 = vld [vmem:[#allocation2] sm:$0xff] }
  0x34   : > { %318 = vsyncadd (%p492_p0), [#allocation3], 4294967168  ;;  %s188_s4 = sshll.u32 %s105_s3, 3  ;;  %s441_s18 = scalar_lea.hbm %s482_s1, %s190_s13 }
  0x35   : > { %s107_s5 = scalar_lea.vmem [#allocation5], %s188_s4  ;;  %s111_s20 = scalar_lea.sflag [#allocation4], %s105_s3 }
  0x36   : > { %s124_s11 = sshll.u32 %s107_s5, 4  ;;  %109 = vst [vmem:[%s107_s5] sm:$0xff] %v108_v0  ;;  %p493_p6 = scmp.ne.s32.totalorder %s486_s16, 0  ;;  %s436_s11 = int_to_ptr.vmem [resolvable:$true] %s124_s11 }
  0x37   : > { %s271_s21 = scalar_lea.vmem %s436_s11, 128  ;;  %s340_s22 = smov [#allocation5]  }
  0x38   : > { %p272_p5 = scmp.ne.s32.totalorder %s436_s11, %s271_s21  ;;  %s275_s10 = sshll.u32 %s340_s22, 4  ;;  %s276_s10 = int_to_ptr.vmem [resolvable:$false] %s275_s10 }
  0x39   : > { %s277_s23 = scalar_lea.vmem %s276_s10, 256  ;;  %p278_p12 = scmp.lt.s32.totalorder %s436_s11, %s276_s10 }
  0x3a   : > { %p273_p9 = pnand %p272_p5, %p493_p6  ;;  %p279_p2 = scmp.lt.s32.totalorder %s277_s23, %s271_s21 }
  0x3c   : > { %p274_p10 = pneg %p273_p9  ;;  %p280_p3 = por %p279_p2, %p278_p12 }
  0x3e   : > { %p281_p4 = pnand %p280_p3, %p274_p10 }
  0x40   : > { %284 = shalt.err (!%p281_p4)
}
  0x41   : > { %s285_s24 = scalar_lea.hbm %s441_s18, 128  ;;  %s289_s27 = scalar_lea.hbm %s482_s1, 256 }
  0x42   : > { %p286_p7 = scmp.ne.s32.totalorder %s441_s18, %s285_s24  ;;  %p290_p13 = scmp.lt.u32.totalorder %s441_s18, %s482_s1 }
  0x43   : > { %p291_p1 = scmp.lt.u32.totalorder %s289_s27, %s285_s24  ;;  %p293_p5 = scmp.lt.u32.totalorder %s285_s24, %s441_s18 }
  0x44   : > { %p287_p8 = pnand %p286_p7, %p493_p6 }
  0x45   : > { %p292_p0 = por %p291_p1, %p290_p13 }
  0x46   : > { %p288_p11 = pneg %p287_p8 }
  0x47   : > { %p294_p9 = por %p293_p5, %p292_p0 }
  0x49   : > { %p295_p10 = pnand %p294_p9, %p288_p11 }
  0x4b   : > { %298 = shalt.err (!%p295_p10)
}
  0x4c   : > { %197 = dma.vmem_to_hbm [thread:$0]  (%p493_p6), %s436_s11, 128, %s441_s18, %s111_s20  }
  0x4d PF: > { %p209_p12 = scmp.ge.s32.totalorder %s337_s9, 2  ;;  %s136_s30 = sand.u32 1, %s325_s6  }
  0x4e   : > { %p494_p2 = scmp.ne.s32.totalorder %s487_s17, 0  ;;  %s137_s2 = scalar_lea.sflag [#allocation4], %s136_s30 }
  0x50   : > { %p204_p3 = pnand %p209_p12, %p494_p2 }
  0x52   : > { %320 = dma.done.wait (!%p204_p3), %s137_s2, 128  }
  0x53   : > { %322 = vsyncadd (!%p204_p3), %s137_s2, 4294967168  ;;  %p12_p4 = scmp.ge.s32.totalorder %s376_s12, 4   ;;  %s495_s6 = smov %s329_s7 }
  0x54   : > { %s496_s7 = smov %s333_s8  ;;  %s497_s8 = smov %s387_s15 }
  0x55   : > { %s498_s9 = smov %s376_s12  ;;  %14 = sbr.rel (!%p12_p4) target bundleno = 4 (0x4), region = 61 }
  0x5c   :  { %142 = vsyncpa [#allocation3], 1 }
  0x5d   :  { %144 = vsyncpa [#allocation3 + $0x1], 1 }
  0x5e   :  { %145 = vsyncpa [#allocation4], 1 }
  0x5f   :  { %147 = vsyncpa [#allocation4 + $0x1], 1 }

// kernel: tpu_custom_call.1
= control target key start
LH: loop header
LB: loop body
LE: loop exit
PB: predicated region body
PF: predicated region fallthrough
CT: control target
= control target key end

     0   :  { %12 = vsyncpa [#allocation3], 0  ;;  %s919_s0 = inlined_call_operand.hbm [shape: bf16[16,128], index: 0, kind: input, shape index: {}]   ;;  %s920_s1 = inlined_call_operand.hbm [shape: bf16[128,128], index: 1, kind: input, shape index: {}]   ;;  %s921_s2 = inlined_call_operand.vmem [shape: f32[1,128], index: 2, kind: input, shape index: {}]   ;;  %s922_s3 = inlined_call_operand.hbm [shape: bf16[128,128], index: 3, kind: input, shape index: {}]   ;;  %s923_s4 = inlined_call_operand.vmem [shape: f32[1,128], index: 4, kind: input, shape index: {}]   ;;  %s924_s5 = inlined_call_operand.hbm [shape: bf16[128,128], index: 5, kind: input, shape index: {}]   ;;  %s925_s6 = inlined_call_operand.vmem [shape: f32[1,128], index: 6, kind: input, shape index: {}]   ;;  %s926_s7 = inlined_call_operand.hbm [shape: f32[16,128], index: 7, kind: output, shape index: {}]  }
   0x1   :  { %13 = vsyncpa [#allocation6], 0 }
   0x2   :  { %14 = vsyncpa [#allocation9], 0 }
   0x3   :  { %15 = vsyncpa [#allocation4], 0  ;;  %s743_s24 = smov [#allocation5]   ;;  %s744_s26 = smov [#allocation2]  }
   0x4   :  { %s33_s25 = sshll.u32 %s743_s24, 4  ;;  %s21_s27 = sshll.u32 %s744_s26, 4  ;;  %s34_s25 = int_to_ptr.vmem [resolvable:$true] %s33_s25  ;;  %s794_s27 = int_to_ptr.vmem [resolvable:$true] %s21_s27 }
   0x5   :  { %s625_s30 = scalar_lea.hbm %s920_s1, 1024 }
   0x6   :  { %p626_p0 = scmp.ne.s32.totalorder %s920_s1, %s625_s30  ;;  %p629_p1 = scmp.lt.u32.totalorder %s625_s30, %s920_s1 }
   0x8   :  { %p631_p2 = pnand %p629_p1, %p626_p0 }
   0xa   :  { %634 = shalt.err (!%p631_p2)
}
   0xb   :  { %s635_s12 = scalar_lea.vmem %s34_s25, 1024  ;;  %p640_p4 = scmp.lt.s32.totalorder %s34_s25, %s34_s25 }
   0xc   :  { %p636_p3 = scmp.ne.s32.totalorder %s34_s25, %s635_s12  ;;  %p641_p5 = scmp.lt.s32.totalorder %s635_s12, %s635_s12 }
   0xe   :  { %p642_p6 = por %p641_p5, %p640_p4 }
  0x10   :  { %p643_p7 = pnand %p642_p6, %p636_p3 }
  0x12   :  { %646 = shalt.err (!%p643_p7)
}
  0x13   :  { %s745_s13 = smov 64   ;;  %s746_s14 = smov 4  }
  0x14   :  { %39 = dma.hbm_to_vmem [thread:$0]  %s920_s1, 1024, %s34_s25, [#allocation6], %s745_s13, %s745_s13, %s746_s14  }
  0x15   :  { %s647_s19 = scalar_lea.hbm %s919_s0, 128 }
  0x16   :  { %p648_p8 = scmp.ne.s32.totalorder %s919_s0, %s647_s19  ;;  %p651_p9 = scmp.lt.u32.totalorder %s647_s19, %s919_s0 }
  0x18   :  { %p653_p10 = pnand %p651_p9, %p648_p8 }
  0x1a   :  { %656 = shalt.err (!%p653_p10)
}
  0x1b   :  { %s657_s24 = scalar_lea.vmem %s794_s27, 128  ;;  %p662_p12 = scmp.lt.s32.totalorder %s794_s27, %s794_s27 }
  0x1c   :  { %p658_p11 = scmp.ne.s32.totalorder %s794_s27, %s657_s24  ;;  %p663_p13 = scmp.lt.s32.totalorder %s657_s24, %s657_s24 }
  0x1e   :  { %p664_p0 = por %p663_p13, %p662_p12 }
  0x20   :  { %p665_p1 = pnand %p664_p0, %p658_p11 }
  0x22   :  { %668 = shalt.err (!%p665_p1)
}
  0x23   :  { %27 = dma.hbm_to_vmem [thread:$0]  %s919_s0, 128, %s794_s27, [#allocation3], %s745_s13, %s745_s13, %s746_s14  }
  0x24   :  { %s747_s26 = smov [#allocation7]   ;;  %s748_s29 = smov [#allocation8]  }
  0x25   :  { %s47_s28 = sshll.u32 %s747_s26, 4  ;;  %s61_s30 = sshll.u32 %s748_s29, 4  ;;  %s48_s28 = int_to_ptr.vmem [resolvable:$true] %s47_s28  ;;  %s831_s30 = int_to_ptr.vmem [resolvable:$true] %s61_s30 }
  0x26   :  { %s669_s10 = scalar_lea.hbm %s922_s3, 1024 }
  0x27   :  { %p670_p2 = scmp.ne.s32.totalorder %s922_s3, %s669_s10  ;;  %p673_p3 = scmp.lt.u32.totalorder %s669_s10, %s922_s3 }
  0x29   :  { %p675_p4 = pnand %p673_p3, %p670_p2 }
  0x2b   :  { %678 = shalt.err (!%p675_p4)
}
  0x2c   :  { %s679_s0 = scalar_lea.vmem %s48_s28, 1024  ;;  %p684_p6 = scmp.lt.s32.totalorder %s48_s28, %s48_s28 }
  0x2d   :  { %p680_p5 = scmp.ne.s32.totalorder %s48_s28, %s679_s0  ;;  %p685_p7 = scmp.lt.s32.totalorder %s679_s0, %s679_s0 }
  0x2f   :  { %p686_p8 = por %p685_p7, %p684_p6 }
  0x31   :  { %p687_p9 = pnand %p686_p8, %p680_p5 }
  0x33   :  { %690 = shalt.err (!%p687_p9)
}
  0x34   :  { %53 = dma.hbm_to_vmem [thread:$0]  %s922_s3, 1024, %s48_s28, [#allocation6], %s745_s13, %s745_s13, %s746_s14  }
  0x35   :  { %s691_s20 = scalar_lea.hbm %s924_s5, 1024 }
  0x36   :  { %p692_p10 = scmp.ne.s32.totalorder %s924_s5, %s691_s20  ;;  %p695_p11 = scmp.lt.u32.totalorder %s691_s20, %s924_s5 }
  0x38   :  { %p697_p12 = pnand %p695_p11, %p692_p10 }
  0x3a   :  { %700 = shalt.err (!%p697_p12)
}
  0x3b   :  { %s701_s1 = scalar_lea.vmem %s831_s30, 1024  ;;  %p706_p0 = scmp.lt.s32.totalorder %s831_s30, %s831_s30 }
  0x3c   :  { %p702_p13 = scmp.ne.s32.totalorder %s831_s30, %s701_s1  ;;  %p707_p1 = scmp.lt.s32.totalorder %s701_s1, %s701_s1 }
  0x3e   :  { %p708_p2 = por %p707_p1, %p706_p0 }
  0x40   :  { %p709_p3 = pnand %p708_p2, %p702_p13 }
  0x42   :  { %712 = shalt.err (!%p709_p3)
}
  0x43   :  { %67 = dma.hbm_to_vmem [thread:$0]  %s924_s5, 1024, %s831_s30, [#allocation9], %s745_s13, %s745_s13, %s746_s14  }
  0x44   :  { %735 = dma.done.wait [#allocation3], 128  }
  0x45   :  { %736 = vsyncadd [#allocation3], 4294967168 }
  0x46   :  { %737 = dma.done.wait [#allocation6], 2048  }
  0x47   :  { %738 = vsyncadd [#allocation6], 4294965248 }
  0x48   :  { %739 = dma.done.wait [#allocation9], 1024  }
  0x49   :  { %740 = vsyncadd [#allocation9], 4294966272  ;;  %v749_v0 = vmov 0.0   ;;  %vm750_vm0 = vmmov 0   ;;  %v592_v1 = vld [vmem:[#allocation5] sm:$0xff]   ;;  %v593_v2 = vld [vmem:[#allocation5 + $0x8] sm:$0xff]  }
  0x4a   :  { %521 = vmatprep.subr.bf16.mxu0 %v749_v0  ;;  %537 = vmatprep.mubr.msk.bf16.mxu0 %vm750_vm0, %v749_v0  ;;  %v594_v3 = vld [vmem:[#allocation5 + $0x10] sm:$0xff]   ;;  %v601_v4 = vld [vmem:[#allocation7] sm:$0xff]   ;;  %v595_v5 = vld [vmem:[#allocation5 + $0x18] sm:$0xff]  }
  0x4b   :  { %541 = vmatprep.subr.bf16.mxu1 %v749_v0  ;;  %557 = vmatprep.mubr.msk.bf16.mxu1 %vm750_vm0, %v749_v0  ;;  %v602_v6 = vld [vmem:[#allocation7 + $0x8] sm:$0xff]   ;;  %v596_v7 = vld [vmem:[#allocation5 + $0x20] sm:$0xff]   ;;  %v603_v8 = vld [vmem:[#allocation7 + $0x10] sm:$0xff]  }
  0x4c   :  { %522 = vmatpush3.bf16.msra.mxu0 %v592_v1  ;;  %542 = vmatpush3.bf16.msra.mxu1 %v601_v4  ;;  %v597_v9 = vld [vmem:[#allocation5 + $0x28] sm:$0xff]   ;;  %v604_v10 = vld [vmem:[#allocation7 + $0x18] sm:$0xff]   ;;  %v598_v11 = vld [vmem:[#allocation5 + $0x30] sm:$0xff]  }
  0x4d   :  { %523 = vmatprep.subr.bf16.mxu0 %v749_v0  ;;  %543 = vmatprep.subr.bf16.mxu1 %v749_v0  ;;  %v605_v12 = vld [vmem:[#allocation7 + $0x20] sm:$0xff]   ;;  %v599_v13 = vld [vmem:[#allocation5 + $0x38] sm:$0xff]   ;;  %v606_v14 = vld [vmem:[#allocation7 + $0x28] sm:$0xff]  }
  0x4e   :  { %v600_v15 = vld [vmem:[#allocation2] sm:$0xff]   ;;  %v607_v16 = vld [vmem:[#allocation7 + $0x30] sm:$0xff]   ;;  %v609_v18 = vld [vmem:[#allocation8] sm:$0xff]  }
  0x4f   :  { %v608_v17 = vld [vmem:[#allocation7 + $0x38] sm:$0xff]   ;;  %v610_v19 = vld [vmem:[#allocation8 + $0x8] sm:$0xff]   ;;  %v611_v20 = vld [vmem:[#allocation8 + $0x10] sm:$0xff]  }
  0x50   :  { %524 = vmatpush3.bf16.msra.mxu0 %v593_v2  ;;  %544 = vmatpush3.bf16.msra.mxu1 %v602_v6  ;;  %v612_v21 = vld [vmem:[#allocation8 + $0x18] sm:$0xff]   ;;  %v613_v22 = vld [vmem:[#allocation8 + $0x20] sm:$0xff]   ;;  %v614_v23 = vld [vmem:[#allocation8 + $0x28] sm:$0xff]  }
  0x51   :  { %525 = vmatprep.subr.bf16.mxu0 %v749_v0  ;;  %545 = vmatprep.subr.bf16.mxu1 %v749_v0  ;;  %v475_v24 = vld [vmem:[%s921_s2] ss:$0 sm:$0xff]  ;;  %v615_v32 = vld [vmem:[#allocation8 + $0x30] sm:$0xff]  }
  0x52   :  { %v616_v33 = vld [vmem:[#allocation8 + $0x38] sm:$0xff]  }
  0x53   :  { %v484_v34 = vld [vmem:[%s923_s4] ss:$0 sm:$0xff]  ;;  %s751_s4 = smov [#allocation10]  }
  0x54   :  { %526 = vmatpush3.bf16.msra.mxu0 %v594_v3  ;;  %546 = vmatpush3.bf16.msra.mxu1 %v603_v8  ;;  %v493_v42 = vld [vmem:[%s925_s6] ss:$0 sm:$0xff]  ;;  %s452_s6 = sshll.u32 %s751_s4, 4  ;;  %s453_s6 = int_to_ptr.vmem [resolvable:$true] %s452_s6 }
  0x55   :  { %527 = vmatprep.subr.bf16.mxu0 %v749_v0  ;;  %547 = vmatprep.subr.bf16.mxu1 %v749_v0  ;;  %s713_s29 = scalar_lea.vmem %s453_s6, 256  ;;  %p718_p5 = scmp.lt.s32.totalorder %s453_s6, %s453_s6 }
  0x56   :  { %p714_p4 = scmp.ne.s32.totalorder %s453_s6, %s713_s29  ;;  %p719_p6 = scmp.lt.s32.totalorder %s713_s29, %s713_s29 }
  0x58   :  { %528 = vmatpush3.bf16.msra.mxu0 %v595_v5  ;;  %548 = vmatpush3.bf16.msra.mxu1 %v604_v10  ;;  %p720_p7 = por %p719_p6, %p718_p5 }
  0x59   :  { %529 = vmatprep.subr.bf16.mxu0 %v749_v0  ;;  %549 = vmatprep.subr.bf16.mxu1 %v749_v0 }
  0x5a   :  { %p721_p8 = pnand %p720_p7, %p714_p4 }
  0x5c   :  { %530 = vmatpush3.bf16.msra.mxu0 %v596_v7  ;;  %550 = vmatpush3.bf16.msra.mxu1 %v605_v12 }
  0x5d   :  { %531 = vmatprep.subr.bf16.mxu0 %v749_v0  ;;  %551 = vmatprep.subr.bf16.mxu1 %v749_v0 }
  0x60   :  { %532 = vmatpush3.bf16.msra.mxu0 %v597_v9  ;;  %552 = vmatpush3.bf16.msra.mxu1 %v606_v14 }
  0x61   :  { %533 = vmatprep.subr.bf16.mxu0 %v749_v0  ;;  %553 = vmatprep.subr.bf16.mxu1 %v749_v0 }
  0x64   :  { %534 = vmatpush3.bf16.msra.mxu0 %v598_v11  ;;  %554 = vmatpush3.bf16.msra.mxu1 %v607_v16 }
  0x65   :  { %535 = vmatprep.subr.bf16.mxu0 %v749_v0  ;;  %555 = vmatprep.subr.bf16.mxu1 %v749_v0 }
  0x68   :  { %536 = vmatpush3.bf16.msra.mxu0 %v599_v13  ;;  %556 = vmatpush3.bf16.msra.mxu1 %v608_v17 }
  0x69   :  { %561 = vmatprep.subr.bf16.mxu0 %v749_v0 }
  0x6b   :  { %538 = vmatmul.mubr.bf16.vlgmr.msra.gmra.mrb[0].mxu0 %v600_v15 }
  0x6c   :  { %577 = vmatprep.mubr.msk.bf16.mxu0 %vm750_vm0, %v749_v0  ;;  %562 = vmatpush3.bf16.msra.mxu0 %v609_v18 }
  0x6d   :  { %563 = vmatprep.subr.bf16.mxu0 %v749_v0 }
  0x70   :  { %564 = vmatpush3.bf16.msra.mxu0 %v610_v19 }
  0x71   :  { %565 = vmatprep.subr.bf16.mxu0 %v749_v0 }
  0x74   :  { %566 = vmatpush3.bf16.msra.mxu0 %v611_v20 }
  0x75   :  { %567 = vmatprep.subr.bf16.mxu0 %v749_v0 }
  0x78   :  { %568 = vmatpush3.bf16.msra.mxu0 %v612_v21 }
  0x79   :  { %569 = vmatprep.subr.bf16.mxu0 %v749_v0 }
  0x7c   :  { %570 = vmatpush3.bf16.msra.mxu0 %v613_v22 }
  0x7d   :  { %571 = vmatprep.subr.bf16.mxu0 %v749_v0 }
  0x80   :  { %572 = vmatpush3.bf16.msra.mxu0 %v614_v23 }
  0x81   :  { %573 = vmatprep.subr.bf16.mxu0 %v749_v0 }
  0x84   :  { %574 = vmatpush3.bf16.msra.mxu0 %v615_v32 }
  0x85   :  { %575 = vmatprep.subr.bf16.mxu0 %v749_v0 }
  0x88   :  { %576 = vmatpush3.bf16.msra.mxu0 %v616_v33 }
 0x13e   :  { %v190_v25 = vpop.f32.mrb[0].mxu0 }
 0x13f   :  { %v539_v26 = vpop.f32.mrb[1].mxu0  ;;  %v203_v28 = vadd.f32 %v475_v24, %v190_v25 }
 0x140   :  { %v193_v27 = vpop.f32.mrb[2].mxu0 }
 0x141   :  { %v204_v29 = vadd.f32 %v475_v24, %v193_v27  ;;  %v540_v30 = vpop.f32.mrb[3].mxu0 }
 0x143   :  { %v205_v31 = vpack.c.bf16 %v204_v29, %v203_v28 }
 0x145   :  { %558 = vmatmul.mubr.bf16.vlgmr.msra.gmra.mrb[0].mxu1 %v205_v31 }
 0x218   :  { %v305_v35 = vpop.f32.mrb[0].mxu1 }
 0x219   :  { %v559_v36 = vpop.f32.mrb[1].mxu1  ;;  %v318_v38 = vadd.f32 %v484_v34, %v305_v35 }
 0x21a   :  { %v308_v37 = vpop.f32.mrb[2].mxu1 }
 0x21b   :  { %v319_v39 = vadd.f32 %v484_v34, %v308_v37  ;;  %v560_v40 = vpop.f32.mrb[3].mxu1 }
 0x21d   :  { %v320_v41 = vpack.c.bf16 %v319_v39, %v318_v38 }
 0x21f   :  { %578 = vmatmul.mubr.bf16.vlgmr.msra.gmra.mrb[4].mxu0 %v320_v41 }
 0x2f2   :  { %v420_v43 = vpop.f32.mrb[4].mxu0 }
 0x2f3   :  { %v433_v44 = vadd.f32 %v493_v42, %v420_v43  ;;  %v579_v45 = vpop.f32.mrb[5].mxu0 }
 0x2f4   :  { %v423_v46 = vpop.f32.mrb[6].mxu0 }
 0x2f5   :  { %v435_v47 = vsub.f32 0.0, %v433_v44  ;;  %v434_v48 = vadd.f32 %v493_v42, %v423_v46  ;;  %v580_v49 = vpop.f32.mrb[7].mxu0 }
 0x2f7   :  { %v437_v50 = vmul.f32 1.442695, %v435_v47  ;;  %v436_v51 = vsub.f32 0.0, %v434_v48 }
 0x2f9   :  { %617 = vpow2.f32 %v437_v50  ;;  %v439_v52 = vmul.f32 1.442695, %v436_v51 }
 0x2fb   :  { %619 = vpow2.f32 %v439_v52 }
 0x303   :  { %v618_v53 = vpop.eup %617 }
 0x304   :  { %v441_v54 = vadd.f32 1.0, %v618_v53 }
 0x305   :  { %v620_v55 = vpop.eup %619 }
 0x306   :  { %621 = vrcp.f32 %v441_v54  ;;  %v442_v56 = vadd.f32 1.0, %v620_v55 }
 0x308   :  { %623 = vrcp.f32 %v442_v56 }
 0x310   :  { %v622_v57 = vpop.eup %621 }
 0x311   :  { %445 = vst [vmem:[#allocation10] sm:$0xff] %v622_v57 }
 0x312   :  { %v624_v58 = vpop.eup %623 }
 0x313   :  { %446 = vst [vmem:[#allocation10 + $0x8] sm:$0xff] %v624_v58 }
 0x314   :  { %724 = shalt.err (!%p721_p8)
}
 0x315   :  { %s725_s9 = scalar_lea.hbm %s926_s7, 256 }
 0x316   :  { %p726_p9 = scmp.ne.s32.totalorder %s926_s7, %s725_s9  ;;  %p729_p10 = scmp.lt.u32.totalorder %s725_s9, %s926_s7 }
 0x318   :  { %p731_p11 = pnand %p729_p10, %p726_p9 }
 0x31a   :  { %734 = shalt.err (!%p731_p11)
}
 0x31b   :  { %s752_s16 = smov 128   ;;  %s753_s0 = smov 8  }
 0x31c   :  { %458 = dma.vmem_to_hbm [thread:$0]  %s453_s6, 256, %s926_s7, [#allocation4], %s752_s16, %s752_s16, %s753_s0  }
 0x31d   :  { %741 = dma.done.wait [#allocation4], 256  }
 0x31e   :  { %742 = vsyncadd [#allocation4], 4294967040 }
 0x31f   :  { %462 = vsyncpa [#allocation3], 1 }
 0x320   :  { %463 = vsyncpa [#allocation6], 1 }
 0x321   :  { %464 = vsyncpa [#allocation9], 1 }
 0x322   :  { %465 = vsyncpa [#allocation4], 1 }

</bundles_post_ra>
